<compile_context>
chip_gen: v6e
topology: v6e:2x2x1
jax: 0.10.0
libtpu: 0.0.40
codegen_flags: <defaults>
</compile_context>

<pallas_src>
import functools

import jax
import jax.numpy as jnp
import numpy as np
from jax import lax
from jax.experimental import pallas as pl
from jax.experimental.pallas import tpu as pltpu


def _round_up(n, m):
    return ((n + m - 1) // m) * m


# ---------------------------------------------------------------------------
# Pallas kernel: one grid step = one batch element, all 4 branches.
# Channels-first inside the kernel: activations are (C, Lp) with L on lanes.
# ---------------------------------------------------------------------------
def _inception_kernel(x_ref,             # (1, Cin, L)        input dtype (f32)
                      wf_ref, bf_ref,    # fused 1x1: (Cfp, Cin) cd, (Cfp, 1) f32
                      w2_ref, b2_ref,    # (c21, 3*c20p) cd,  (c21, 1) f32
                      w3_ref, b3_ref,    # (c31, 5*c30p) cd,  (c31, 1) f32
                      w4_ref, b4_ref,    # (c4, Cin) cd,      (c4, 1) f32
                      o_ref,             # (1, c_out, L)      out dtype
                      xp_buf,            # VMEM (Cin, Lp)     compute dtype
                      *, c1, c1p, c20p, c30p, c21, c31, l_true, lp):
    cd = xp_buf.dtype
    cin = x_ref.shape[1]

    # ---- stage the (cast) input into a lane-padded working buffer --------
    if lp == l_true:
        xp = x_ref[0].astype(cd)                        # (Cin, Lp)
    else:
        xp_buf[:, l_true:] = jnp.zeros((cin, lp - l_true), cd)
        xp_buf[:, :l_true] = x_ref[0].astype(cd)
        xp = xp_buf[...]                                # (Cin, Lp)

    # ---- loop-invariant lane-validity masks (one iota per grid step) -----
    idx = lax.broadcasted_iota(jnp.int32, (1, lp), 1)
    masks = {s: (idx >= s) & (idx < l_true + s) for s in (2, 1, -1, -2)}

    def shifted(t, s):
        # out[:, l] = t[:, l - s] if 0 <= l - s < l_true else 0  (for l < l_true)
        r = pltpu.roll(t, shift=s % lp, axis=1)
        return jnp.where(masks[s], r, jnp.zeros_like(r))

    relu = lambda v: jnp.maximum(v, 0.0)

    # ---- fused 1x1 convs: branch 1 + bottlenecks of branches 2 & 3 -------
    z = relu(jnp.dot(wf_ref[...], xp, preferred_element_type=jnp.float32)
             + bf_ref[...])                             # (Cfp, Lp) f32
    p1 = z[0:c1]
    t2 = z[c1p:c1p + c20p].astype(cd)                   # 8-aligned slices
    t3 = z[c1p + c20p:c1p + c20p + c30p].astype(cd)

    # ---- branch 2: 3-tap 'same' conv as a single im2col matmul -----------
    stk2 = jnp.concatenate([shifted(t2, 1), t2, shifted(t2, -1)], axis=0)
    p2 = relu(jnp.dot(w2_ref[...], stk2, preferred_element_type=jnp.float32)
              + b2_ref[...])

    # ---- branch 3: 5-tap 'same' conv as a single im2col matmul -----------
    stk3 = jnp.concatenate([shifted(t3, 2), shifted(t3, 1), t3,
                            shifted(t3, -1), shifted(t3, -2)], axis=0)
    p3 = relu(jnp.dot(w3_ref[...], stk3, preferred_element_type=jnp.float32)
              + b3_ref[...])

    # ---- branch 4: maxpool(k=3, pad=1, stride=1) -> 1x1 conv --------------
    left = pltpu.roll(xp, shift=1, axis=1)              # left[l]  = xp[l-1]
    right = pltpu.roll(xp, shift=(lp - 1) % lp, axis=1)  # right[l] = xp[l+1]
    pooled = jnp.maximum(xp, jnp.where(masks[1], left, xp))
    pooled = jnp.maximum(pooled, jnp.where(masks[-1], right, xp))
    p4 = relu(jnp.dot(w4_ref[...], pooled, preferred_element_type=jnp.float32)
              + b4_ref[...])

    # ---- per-branch stores straight into the output channel slices --------
    o_ref[0, 0:c1, :] = p1[:, :l_true].astype(o_ref.dtype)
    o_ref[0, c1:c1 + c21, :] = p2[:, :l_true].astype(o_ref.dtype)
    o_ref[0, c1 + c21:c1 + c21 + c31, :] = p3[:, :l_true].astype(o_ref.dtype)
    o_ref[0, c1 + c21 + c31:, :] = p4[:, :l_true].astype(o_ref.dtype)


# ---------------------------------------------------------------------------
# Wrapper. Takes PyTorch-layout input (N, Cin, L) and PyTorch-layout params
# (Conv1d weights (Cout, Cin, K), biases (Cout,)). Returns (N, C_out, L).
# ---------------------------------------------------------------------------
def inception_1d(x_ncl, torch_params, *, compute_dtype=jnp.bfloat16,
                 out_dtype=jnp.float32):
    (w1, b1, w21, b21, w22, b22, w31, b31, w32, b32, w4, b4) = torch_params
    N, Cin, L = x_ncl.shape
    c1 = w1.shape[0]
    c20, c21 = w21.shape[0], w22.shape[0]
    c30, c31 = w31.shape[0], w32.shape[0]
    c4 = w4.shape[0]
    c_out = c1 + c21 + c31 + c4

    # pad the three fused 1x1 groups to multiples of 8 (sublane alignment of
    # the z slices and of the im2col concat). Padded rows/biases are zero, and
    # the downstream conv weights get zero columns -> no effect on results.
    c1p, c20p, c30p = _round_up(c1, 8), _round_up(c20, 8), _round_up(c30, 8)

    def pad_rows(w2d, rows):
        return jnp.pad(w2d, ((0, rows - w2d.shape[0]), (0, 0)))

    wf = jnp.concatenate([pad_rows(w1[:, :, 0], c1p),
                          pad_rows(w21[:, :, 0], c20p),
                          pad_rows(w31[:, :, 0], c30p)],
                         axis=0).astype(compute_dtype)              # (Cfp, Cin)
    bf = jnp.concatenate([jnp.pad(b1, (0, c1p - c1)),
                          jnp.pad(b21, (0, c20p - c20)),
                          jnp.pad(b31, (0, c30p - c30))],
                         axis=0)[:, None].astype(jnp.float32)       # (Cfp, 1)

    # K-tap conv weights flattened for im2col (tap-major: [co, k*cin_p + ci])
    def flat_tap_weight(w_oik, cin_p):
        cout, cin_b, k = w_oik.shape
        w_p = jnp.pad(w_oik, ((0, 0), (0, cin_p - cin_b), (0, 0)))
        return jnp.transpose(w_p, (0, 2, 1)).reshape(cout, k * cin_p)

    w2f = flat_tap_weight(w22, c20p).astype(compute_dtype)          # (c21, 3*c20p)
    b2c = b22[:, None].astype(jnp.float32)
    w3f = flat_tap_weight(w32, c30p).astype(compute_dtype)          # (c31, 5*c30p)
    b3c = b32[:, None].astype(jnp.float32)
    w4m = w4[:, :, 0].astype(compute_dtype)                         # (c4, Cin)
    b4c = b4[:, None].astype(jnp.float32)

    Lp = _round_up(L, 128)                      # in-kernel lane padding only

    # --- explicit VMEM budget (block_b = 1 batch element per grid step) ----
    weights = (wf, bf, w2f, b2c, w3f, b3c, w4m, b4c)
    weight_bytes = sum(int(np.prod(a.shape)) * jnp.dtype(a.dtype).itemsize
                       for a in weights)
    in_block = Cin * L * jnp.dtype(x_ncl.dtype).itemsize
    out_block = c_out * L * jnp.dtype(out_dtype).itemsize
    cd_size = jnp.dtype(compute_dtype).itemsize
    work = (Cin * (cd_size + 4)                     # staged input + pooled
            + (c1p + c20p + c30p) * 4               # fused z (f32)
            + (3 * c20p + 5 * c30p) * cd_size       # im2col stacks
            + c_out * 4) * Lp                       # branch outputs (f32)
    vmem_need = 2 * (in_block + out_block) + 2 * weight_bytes + work + (1 << 20)
    vmem_limit = int(min(max(2 * vmem_need, 32 * 2**20), 64 * 2**20))
    # TODO(synk): if vmem_need ever exceeds ~64 MiB (huge L), tile L as well.

    kernel = functools.partial(
        _inception_kernel, c1=c1, c1p=c1p, c20p=c20p, c30p=c30p,
        c21=c21, c31=c31, l_true=L, lp=Lp)

    def full_spec(arr):
        nd = arr.ndim
        return pl.BlockSpec(arr.shape, lambda i, _n=nd: (0,) * _n)

    out = pl.pallas_call(
        kernel,
        out_shape=jax.ShapeDtypeStruct((N, c_out, L), out_dtype),
        grid_spec=pltpu.PrefetchScalarGridSpec(
            num_scalar_prefetch=0,
            grid=(N,),
            in_specs=[
                pl.BlockSpec((1, Cin, L), lambda i: (i, 0, 0)),
                full_spec(wf), full_spec(bf),
                full_spec(w2f), full_spec(b2c),
                full_spec(w3f), full_spec(b3c),
                full_spec(w4m), full_spec(b4c),
            ],
            out_specs=pl.BlockSpec((1, c_out, L), lambda i: (i, 0, 0)),
            scratch_shapes=[pltpu.VMEM((Cin, Lp), compute_dtype)],
        ),
        compiler_params=pltpu.CompilerParams(
            dimension_semantics=("parallel",),
            vmem_limit_bytes=vmem_limit),
    )(x_ncl, wf, bf, w2f, b2c, w3f, b3c, w4m, b4c)

    return out


# ---------------------------------------------------------------------------
# Pure-JAX reference (PyTorch semantics) for correctness checking.
# ---------------------------------------------------------------------------
def _ref_conv1d(x_ncl, w_oik, b, pad):
    y = lax.conv_general_dilated(
        x_ncl, w_oik, window_strides=(1,), padding=[(pad, pad)],
        dimension_numbers=("NCH", "OIH", "NCH"))
    return y + b.reshape(1, -1, 1)


def _reference(x_ncl, params):
    (w1, b1, w21, b21, w22, b22, w31, b31, w32, b32, w4, b4) = params
    relu = lambda v: jnp.maximum(v, 0.0)
    p1 = relu(_ref_conv1d(x_ncl, w1, b1, 0))
    p2 = relu(_ref_conv1d(relu(_ref_conv1d(x_ncl, w21, b21, 0)), w22, b22, 1))
    p3 = relu(_ref_conv1d(relu(_ref_conv1d(x_ncl, w31, b31, 0)), w32, b32, 2))
    pooled = lax.reduce_window(x_ncl, -jnp.inf, lax.max,
                               window_dimensions=(1, 1, 3),
                               window_strides=(1, 1, 1),
                               padding=[(0, 0), (0, 0), (1, 1)])
    p4 = relu(_ref_conv1d(pooled, w4, b4, 0))
    return jnp.concatenate([p1, p2, p3, p4], axis=1)


def _make_params(key, in_c, c1, c2, c3, c4):
    keys = jax.random.split(key, 12)
    mk_w = lambda k, s: (0.1 * jax.random.normal(k, s)).astype(jnp.float32)
    mk_b = lambda k, c: (0.1 * jax.random.normal(k, (c,))).astype(jnp.float32)
    return (mk_w(keys[0], (c1, in_c, 1)),      mk_b(keys[1], c1),
            mk_w(keys[2], (c2[0], in_c, 1)),   mk_b(keys[3], c2[0]),
            mk_w(keys[4], (c2[1], c2[0], 3)),  mk_b(keys[5], c2[1]),
            mk_w(keys[6], (c3[0], in_c, 1)),   mk_b(keys[7], c3[0]),
            mk_w(keys[8], (c3[1], c3[0], 5)),  mk_b(keys[9], c3[1]),
            mk_w(keys[10], (c4, in_c, 1)),     mk_b(keys[11], c4))


if __name__ == "__main__":
    N, in_c, L = 2, 4, 16
    c1, c2, c3, c4 = 8, (4, 8), (4, 8), 8

    key = jax.random.PRNGKey(0)
    kx, kp = jax.random.split(key)
    x = jax.random.normal(kx, (N, in_c, L), dtype=jnp.float32)   # PyTorch NCL layout
    params = _make_params(kp, in_c, c1, c2, c3, c4)

    ref = jax.block_until_ready(_reference(x, params))

    # exact-arithmetic path (f32 through the MXU) - tight tolerance
    out_f32 = jax.block_until_ready(
        inception_1d(x, params, compute_dtype=jnp.float32))
    np.testing.assert_allclose(np.asarray(out_f32), np.asarray(ref),
                               rtol=1e-5, atol=1e-5)

    # optimized path (bf16 MXU inputs, f32 accumulation/epilogue) - relaxed tol
    out = jax.block_until_ready(inception_1d(x, params))
    np.testing.assert_allclose(np.asarray(out), np.asarray(ref),
                               rtol=2e-2, atol=2e-2)

    assert out.shape == (N, c1 + c2[1] + c3[1] + c4, L)
    print("KERNEL_OK")
</pallas_src>

<mosaic_0001>
module attributes {stable_mosaic.version = 11 : i64} {
  func.func @_inception_kernel(%arg0: i32, %arg1: memref<1x4x16xf32, #tpu.memory_space<vmem>>, %arg2: memref<24x4xf32, #tpu.memory_space<vmem>>, %arg3: memref<24x1xf32, #tpu.memory_space<vmem>>, %arg4: memref<8x24xf32, #tpu.memory_space<vmem>>, %arg5: memref<8x1xf32, #tpu.memory_space<vmem>>, %arg6: memref<8x40xf32, #tpu.memory_space<vmem>>, %arg7: memref<8x1xf32, #tpu.memory_space<vmem>>, %arg8: memref<8x4xf32, #tpu.memory_space<vmem>>, %arg9: memref<8x1xf32, #tpu.memory_space<vmem>>, %arg10: memref<1x32x16xf32, #tpu.memory_space<vmem>>, %arg11: memref<4x128xf32, #tpu.memory_space<vmem>>) attributes {dimension_semantics = [#tpu.dimension_semantics<parallel>], iteration_bounds = array<i64: 2>, scalar_prefetch = 0 : i64, scratch_operands = 1 : i64, tpu.core_type = #tpu.core_type<tc>, window_params = [{transform_indices = @transform_0, window_bounds = array<i64: 1, 4, 16>}, {pipeline_mode = #tpu.pipeline_mode<synchronous>, transform_indices = @transform_1, window_bounds = array<i64: 24, 4>}, {pipeline_mode = #tpu.pipeline_mode<synchronous>, transform_indices = @transform_2, window_bounds = array<i64: 24, 1>}, {pipeline_mode = #tpu.pipeline_mode<synchronous>, transform_indices = @transform_3, window_bounds = array<i64: 8, 24>}, {pipeline_mode = #tpu.pipeline_mode<synchronous>, transform_indices = @transform_4, window_bounds = array<i64: 8, 1>}, {pipeline_mode = #tpu.pipeline_mode<synchronous>, transform_indices = @transform_5, window_bounds = array<i64: 8, 40>}, {pipeline_mode = #tpu.pipeline_mode<synchronous>, transform_indices = @transform_6, window_bounds = array<i64: 8, 1>}, {pipeline_mode = #tpu.pipeline_mode<synchronous>, transform_indices = @transform_7, window_bounds = array<i64: 8, 4>}, {pipeline_mode = #tpu.pipeline_mode<synchronous>, transform_indices = @transform_8, window_bounds = array<i64: 8, 1>}, {transform_indices = @transform_9, window_bounds = array<i64: 1, 32, 16>}]} {
    %cst = arith.constant 0.000000e+00 : f32
    %0 = vector.broadcast %cst : f32 to vector<4x112xf32>
    %c0 = arith.constant 0 : index
    %c16 = arith.constant 16 : index
    %1 = vector.load %arg11[%c0, %c16] : memref<4x128xf32, #tpu.memory_space<vmem>>, vector<4x112xf32>
    tpu.vector_store %arg11[%c0, %c16], %0 {strides = array<i32>} : memref<4x128xf32, #tpu.memory_space<vmem>>, vector<4x112xf32>,
    %c0_0 = arith.constant 0 : index
    %c0_1 = arith.constant 0 : index
    %c0_2 = arith.constant 0 : index
    %2 = vector.load %arg1[%c0_0, %c0_1, %c0_2] : memref<1x4x16xf32, #tpu.memory_space<vmem>>, vector<1x4x16xf32>
    %3 = vector.shape_cast %2 : vector<1x4x16xf32> to vector<4x16xf32>
    %c0_3 = arith.constant 0 : index
    %c0_4 = arith.constant 0 : index
    %4 = vector.load %arg11[%c0_3, %c0_4] : memref<4x128xf32, #tpu.memory_space<vmem>>, vector<4x16xf32>
    tpu.vector_store %arg11[%c0_3, %c0_4], %3 {strides = array<i32>} : memref<4x128xf32, #tpu.memory_space<vmem>>, vector<4x16xf32>,
    %c0_5 = arith.constant 0 : index
    %c0_6 = arith.constant 0 : index
    %5 = vector.load %arg11[%c0_5, %c0_6] : memref<4x128xf32, #tpu.memory_space<vmem>>, vector<4x128xf32>
    %6 = tpu.iota {dimensions = array<i32: 1>} : vector<1x128xi32>
    %c2_i32 = arith.constant 2 : i32
    %7 = vector.broadcast %c2_i32 : i32 to vector<1x128xi32>
    %8 = arith.cmpi sge, %6, %7 : vector<1x128xi32>
    %c18_i32 = arith.constant 18 : i32
    %9 = vector.broadcast %c18_i32 : i32 to vector<1x128xi32>
    %10 = arith.cmpi slt, %6, %9 : vector<1x128xi32>
    %11 = arith.andi %8, %10 : vector<1x128xi1>
    %c1_i32 = arith.constant 1 : i32
    %12 = vector.broadcast %c1_i32 : i32 to vector<1x128xi32>
    %13 = arith.cmpi sge, %6, %12 : vector<1x128xi32>
    %c17_i32 = arith.constant 17 : i32
    %14 = vector.broadcast %c17_i32 : i32 to vector<1x128xi32>
    %15 = arith.cmpi slt, %6, %14 : vector<1x128xi32>
    %16 = arith.andi %13, %15 : vector<1x128xi1>
    %c-1_i32 = arith.constant -1 : i32
    %17 = vector.broadcast %c-1_i32 : i32 to vector<1x128xi32>
    %18 = arith.cmpi sge, %6, %17 : vector<1x128xi32>
    %c15_i32 = arith.constant 15 : i32
    %19 = vector.broadcast %c15_i32 : i32 to vector<1x128xi32>
    %20 = arith.cmpi slt, %6, %19 : vector<1x128xi32>
    %21 = arith.andi %18, %20 : vector<1x128xi1>
    %c-2_i32 = arith.constant -2 : i32
    %22 = vector.broadcast %c-2_i32 : i32 to vector<1x128xi32>
    %23 = arith.cmpi sge, %6, %22 : vector<1x128xi32>
    %c14_i32 = arith.constant 14 : i32
    %24 = vector.broadcast %c14_i32 : i32 to vector<1x128xi32>
    %25 = arith.cmpi slt, %6, %24 : vector<1x128xi32>
    %26 = arith.andi %23, %25 : vector<1x128xi1>
    %c0_7 = arith.constant 0 : index
    %c0_8 = arith.constant 0 : index
    %27 = vector.load %arg2[%c0_7, %c0_8] : memref<24x4xf32, #tpu.memory_space<vmem>>, vector<24x4xf32>
    %cst_9 = arith.constant dense<0.000000e+00> : vector<24x128xf32>
    %28 = tpu.matmul %27, %5, %cst_9 {dimension_numbers = #tpu.dot_dimension_numbers<[1], [0], [0], [1], [0, 0, 1, 1], [], []>} : vector<24x4xf32>, vector<4x128xf32>, vector<24x128xf32> -> vector<24x128xf32>
    %c0_10 = arith.constant 0 : index
    %c0_11 = arith.constant 0 : index
    %29 = vector.load %arg3[%c0_10, %c0_11] : memref<24x1xf32, #tpu.memory_space<vmem>>, vector<24x1xf32>
    %30 = vector.broadcast %29 : vector<24x1xf32> to vector<24x128xf32>
    %31 = arith.addf %28, %30 : vector<24x128xf32>
    %cst_12 = arith.constant 0.000000e+00 : f32
    %32 = vector.broadcast %cst_12 : f32 to vector<24x128xf32>
    %33 = arith.maximumf %31, %32 : vector<24x128xf32>
    %34 = vector.extract_strided_slice %33 {offsets = [0, 0], sizes = [8, 128], strides = [1, 1]} : vector<24x128xf32> to vector<8x128xf32>
    %35 = vector.extract_strided_slice %33 {offsets = [8, 0], sizes = [8, 128], strides = [1, 1]} : vector<24x128xf32> to vector<8x128xf32>
    %36 = vector.extract_strided_slice %33 {offsets = [16, 0], sizes = [8, 128], strides = [1, 1]} : vector<24x128xf32> to vector<8x128xf32>
    %c1_i32_13 = arith.constant 1 : i32
    %37 = tpu.dynamic_rotate %35 by %c1_i32_13 dim 1 : vector<8x128xf32>, i32 -> vector<8x128xf32>
    %cst_14 = arith.constant 0.000000e+00 : f32
    %38 = vector.broadcast %cst_14 : f32 to vector<8x128xf32>
    %39 = vector.shape_cast %16 : vector<1x128xi1> to vector<1x128xi1>
    %40 = vector.broadcast %39 : vector<1x128xi1> to vector<8x128xi1>
    %41 = arith.select %40, %37, %38 : vector<8x128xi1>, vector<8x128xf32>
    %c127_i32 = arith.constant 127 : i32
    %42 = tpu.dynamic_rotate %35 by %c127_i32 dim 1 : vector<8x128xf32>, i32 -> vector<8x128xf32>
    %cst_15 = arith.constant 0.000000e+00 : f32
    %43 = vector.broadcast %cst_15 : f32 to vector<8x128xf32>
    %44 = vector.shape_cast %21 : vector<1x128xi1> to vector<1x128xi1>
    %45 = vector.broadcast %44 : vector<1x128xi1> to vector<8x128xi1>
    %46 = arith.select %45, %42, %43 : vector<8x128xi1>, vector<8x128xf32>
    %47 = tpu.concatenate %41, %35, %46 in 0 : vector<8x128xf32>, vector<8x128xf32>, vector<8x128xf32> -> vector<24x128xf32>
    %c0_16 = arith.constant 0 : index
    %c0_17 = arith.constant 0 : index
    %48 = vector.load %arg4[%c0_16, %c0_17] : memref<8x24xf32, #tpu.memory_space<vmem>>, vector<8x24xf32>
    %cst_18 = arith.constant dense<0.000000e+00> : vector<8x128xf32>
    %49 = tpu.matmul %48, %47, %cst_18 {dimension_numbers = #tpu.dot_dimension_numbers<[1], [0], [0], [1], [0, 0, 1, 1], [], []>} : vector<8x24xf32>, vector<24x128xf32>, vector<8x128xf32> -> vector<8x128xf32>
    %c0_19 = arith.constant 0 : index
    %c0_20 = arith.constant 0 : index
    %50 = vector.load %arg5[%c0_19, %c0_20] : memref<8x1xf32, #tpu.memory_space<vmem>>, vector<8x1xf32>
    %51 = vector.broadcast %50 : vector<8x1xf32> to vector<8x128xf32>
    %52 = arith.addf %49, %51 : vector<8x128xf32>
    %cst_21 = arith.constant 0.000000e+00 : f32
    %53 = vector.broadcast %cst_21 : f32 to vector<8x128xf32>
    %54 = arith.maximumf %52, %53 : vector<8x128xf32>
    %c2_i32_22 = arith.constant 2 : i32
    %55 = tpu.dynamic_rotate %36 by %c2_i32_22 dim 1 : vector<8x128xf32>, i32 -> vector<8x128xf32>
    %cst_23 = arith.constant 0.000000e+00 : f32
    %56 = vector.broadcast %cst_23 : f32 to vector<8x128xf32>
    %57 = vector.shape_cast %11 : vector<1x128xi1> to vector<1x128xi1>
    %58 = vector.broadcast %57 : vector<1x128xi1> to vector<8x128xi1>
    %59 = arith.select %58, %55, %56 : vector<8x128xi1>, vector<8x128xf32>
    %c1_i32_24 = arith.constant 1 : i32
    %60 = tpu.dynamic_rotate %36 by %c1_i32_24 dim 1 : vector<8x128xf32>, i32 -> vector<8x128xf32>
    %cst_25 = arith.constant 0.000000e+00 : f32
    %61 = vector.broadcast %cst_25 : f32 to vector<8x128xf32>
    %62 = vector.shape_cast %16 : vector<1x128xi1> to vector<1x128xi1>
    %63 = vector.broadcast %62 : vector<1x128xi1> to vector<8x128xi1>
    %64 = arith.select %63, %60, %61 : vector<8x128xi1>, vector<8x128xf32>
    %c127_i32_26 = arith.constant 127 : i32
    %65 = tpu.dynamic_rotate %36 by %c127_i32_26 dim 1 : vector<8x128xf32>, i32 -> vector<8x128xf32>
    %cst_27 = arith.constant 0.000000e+00 : f32
    %66 = vector.broadcast %cst_27 : f32 to vector<8x128xf32>
    %67 = vector.shape_cast %21 : vector<1x128xi1> to vector<1x128xi1>
    %68 = vector.broadcast %67 : vector<1x128xi1> to vector<8x128xi1>
    %69 = arith.select %68, %65, %66 : vector<8x128xi1>, vector<8x128xf32>
    %c126_i32 = arith.constant 126 : i32
    %70 = tpu.dynamic_rotate %36 by %c126_i32 dim 1 : vector<8x128xf32>, i32 -> vector<8x128xf32>
    %cst_28 = arith.constant 0.000000e+00 : f32
    %71 = vector.broadcast %cst_28 : f32 to vector<8x128xf32>
    %72 = vector.shape_cast %26 : vector<1x128xi1> to vector<1x128xi1>
    %73 = vector.broadcast %72 : vector<1x128xi1> to vector<8x128xi1>
    %74 = arith.select %73, %70, %71 : vector<8x128xi1>, vector<8x128xf32>
    %75 = tpu.concatenate %59, %64, %36, %69, %74 in 0 : vector<8x128xf32>, vector<8x128xf32>, vector<8x128xf32>, vector<8x128xf32>, vector<8x128xf32> -> vector<40x128xf32>
    %c0_29 = arith.constant 0 : index
    %c0_30 = arith.constant 0 : index
    %76 = vector.load %arg6[%c0_29, %c0_30] : memref<8x40xf32, #tpu.memory_space<vmem>>, vector<8x40xf32>
    %cst_31 = arith.constant dense<0.000000e+00> : vector<8x128xf32>
    %77 = tpu.matmul %76, %75, %cst_31 {dimension_numbers = #tpu.dot_dimension_numbers<[1], [0], [0], [1], [0, 0, 1, 1], [], []>} : vector<8x40xf32>, vector<40x128xf32>, vector<8x128xf32> -> vector<8x128xf32>
    %c0_32 = arith.constant 0 : index
    %c0_33 = arith.constant 0 : index
    %78 = vector.load %arg7[%c0_32, %c0_33] : memref<8x1xf32, #tpu.memory_space<vmem>>, vector<8x1xf32>
    %79 = vector.broadcast %78 : vector<8x1xf32> to vector<8x128xf32>
    %80 = arith.addf %77, %79 : vector<8x128xf32>
    %cst_34 = arith.constant 0.000000e+00 : f32
    %81 = vector.broadcast %cst_34 : f32 to vector<8x128xf32>
    %82 = arith.maximumf %80, %81 : vector<8x128xf32>
    %c1_i32_35 = arith.constant 1 : i32
    %83 = tpu.dynamic_rotate %5 by %c1_i32_35 dim 1 : vector<4x128xf32>, i32 -> vector<4x128xf32>
    %c127_i32_36 = arith.constant 127 : i32
    %84 = tpu.dynamic_rotate %5 by %c127_i32_36 dim 1 : vector<4x128xf32>, i32 -> vector<4x128xf32>
    %85 = vector.shape_cast %16 : vector<1x128xi1> to vector<1x128xi1>
    %86 = vector.broadcast %85 : vector<1x128xi1> to vector<4x128xi1>
    %87 = arith.select %86, %83, %5 : vector<4x128xi1>, vector<4x128xf32>
    %88 = arith.maximumf %5, %87 : vector<4x128xf32>
    %89 = vector.shape_cast %21 : vector<1x128xi1> to vector<1x128xi1>
    %90 = vector.broadcast %89 : vector<1x128xi1> to vector<4x128xi1>
    %91 = arith.select %90, %84, %5 : vector<4x128xi1>, vector<4x128xf32>
    %92 = arith.maximumf %88, %91 : vector<4x128xf32>
    %c0_37 = arith.constant 0 : index
    %c0_38 = arith.constant 0 : index
    %93 = vector.load %arg8[%c0_37, %c0_38] : memref<8x4xf32, #tpu.memory_space<vmem>>, vector<8x4xf32>
    %cst_39 = arith.constant dense<0.000000e+00> : vector<8x128xf32>
    %94 = tpu.matmul %93, %92, %cst_39 {dimension_numbers = #tpu.dot_dimension_numbers<[1], [0], [0], [1], [0, 0, 1, 1], [], []>} : vector<8x4xf32>, vector<4x128xf32>, vector<8x128xf32> -> vector<8x128xf32>
    %c0_40 = arith.constant 0 : index
    %c0_41 = arith.constant 0 : index
    %95 = vector.load %arg9[%c0_40, %c0_41] : memref<8x1xf32, #tpu.memory_space<vmem>>, vector<8x1xf32>
    %96 = vector.broadcast %95 : vector<8x1xf32> to vector<8x128xf32>
    %97 = arith.addf %94, %96 : vector<8x128xf32>
    %cst_42 = arith.constant 0.000000e+00 : f32
    %98 = vector.broadcast %cst_42 : f32 to vector<8x128xf32>
    %99 = arith.maximumf %97, %98 : vector<8x128xf32>
    %100 = vector.extract_strided_slice %34 {offsets = [0, 0], sizes = [8, 16], strides = [1, 1]} : vector<8x128xf32> to vector<8x16xf32>
    %c0_43 = arith.constant 0 : index
    %c0_44 = arith.constant 0 : index
    %c0_45 = arith.constant 0 : index
    %101 = vector.load %arg10[%c0_43, %c0_44, %c0_45] : memref<1x32x16xf32, #tpu.memory_space<vmem>>, vector<1x8x16xf32>
    %102 = vector.shape_cast %101 : vector<1x8x16xf32> to vector<8x16xf32>
    %103 = vector.shape_cast %100 : vector<8x16xf32> to vector<1x8x16xf32>
    tpu.vector_store %arg10[%c0_43, %c0_44, %c0_45], %103 {strides = array<i32>} : memref<1x32x16xf32, #tpu.memory_space<vmem>>, vector<1x8x16xf32>,
    %104 = vector.extract_strided_slice %54 {offsets = [0, 0], sizes = [8, 16], strides = [1, 1]} : vector<8x128xf32> to vector<8x16xf32>
    %c0_46 = arith.constant 0 : index
    %c8 = arith.constant 8 : index
    %c0_47 = arith.constant 0 : index
    %105 = vector.load %arg10[%c0_46, %c8, %c0_47] : memref<1x32x16xf32, #tpu.memory_space<vmem>>, vector<1x8x16xf32>
    %106 = vector.shape_cast %105 : vector<1x8x16xf32> to vector<8x16xf32>
    %107 = vector.shape_cast %104 : vector<8x16xf32> to vector<1x8x16xf32>
    tpu.vector_store %arg10[%c0_46, %c8, %c0_47], %107 {strides = array<i32>} : memref<1x32x16xf32, #tpu.memory_space<vmem>>, vector<1x8x16xf32>,
    %108 = vector.extract_strided_slice %82 {offsets = [0, 0], sizes = [8, 16], strides = [1, 1]} : vector<8x128xf32> to vector<8x16xf32>
    %c0_48 = arith.constant 0 : index
    %c16_49 = arith.constant 16 : index
    %c0_50 = arith.constant 0 : index
    %109 = vector.load %arg10[%c0_48, %c16_49, %c0_50] : memref<1x32x16xf32, #tpu.memory_space<vmem>>, vector<1x8x16xf32>
    %110 = vector.shape_cast %109 : vector<1x8x16xf32> to vector<8x16xf32>
    %111 = vector.shape_cast %108 : vector<8x16xf32> to vector<1x8x16xf32>
    tpu.vector_store %arg10[%c0_48, %c16_49, %c0_50], %111 {strides = array<i32>} : memref<1x32x16xf32, #tpu.memory_space<vmem>>, vector<1x8x16xf32>,
    %112 = vector.extract_strided_slice %99 {offsets = [0, 0], sizes = [8, 16], strides = [1, 1]} : vector<8x128xf32> to vector<8x16xf32>
    %c0_51 = arith.constant 0 : index
    %c24 = arith.constant 24 : index
    %c0_52 = arith.constant 0 : index
    %113 = vector.load %arg10[%c0_51, %c24, %c0_52] : memref<1x32x16xf32, #tpu.memory_space<vmem>>, vector<1x8x16xf32>
    %114 = vector.shape_cast %113 : vector<1x8x16xf32> to vector<8x16xf32>
    %115 = vector.shape_cast %112 : vector<8x16xf32> to vector<1x8x16xf32>
    tpu.vector_store %arg10[%c0_51, %c24, %c0_52], %115 {strides = array<i32>} : memref<1x32x16xf32, #tpu.memory_space<vmem>>, vector<1x8x16xf32>,
    return
  }
  func.func @transform_0(%arg0: i32) -> (i32, i32, i32) {
    %c0_i32 = arith.constant 0 : i32
    %c0_i32_0 = arith.constant 0 : i32
    %c0_i32_1 = arith.constant 0 : i32
    return %arg0, %c0_i32, %c0_i32_0 : i32, i32, i32
  }
  func.func @transform_1(%arg0: i32) -> (i32, i32) {
    %c0_i32 = arith.constant 0 : i32
    %c0_i32_0 = arith.constant 0 : i32
    %c0_i32_1 = arith.constant 0 : i32
    return %c0_i32, %c0_i32_0 : i32, i32
  }
  func.func @transform_2(%arg0: i32) -> (i32, i32) {
    %c0_i32 = arith.constant 0 : i32
    %c0_i32_0 = arith.constant 0 : i32
    %c0_i32_1 = arith.constant 0 : i32
    return %c0_i32, %c0_i32_0 : i32, i32
  }
  func.func @transform_3(%arg0: i32) -> (i32, i32) {
    %c0_i32 = arith.constant 0 : i32
    %c0_i32_0 = arith.constant 0 : i32
    %c0_i32_1 = arith.constant 0 : i32
    return %c0_i32, %c0_i32_0 : i32, i32
  }
  func.func @transform_4(%arg0: i32) -> (i32, i32) {
    %c0_i32 = arith.constant 0 : i32
    %c0_i32_0 = arith.constant 0 : i32
    %c0_i32_1 = arith.constant 0 : i32
    return %c0_i32, %c0_i32_0 : i32, i32
  }
  func.func @transform_5(%arg0: i32) -> (i32, i32) {
    %c0_i32 = arith.constant 0 : i32
    %c0_i32_0 = arith.constant 0 : i32
    %c0_i32_1 = arith.constant 0 : i32
    return %c0_i32, %c0_i32_0 : i32, i32
  }
  func.func @transform_6(%arg0: i32) -> (i32, i32) {
    %c0_i32 = arith.constant 0 : i32
    %c0_i32_0 = arith.constant 0 : i32
    %c0_i32_1 = arith.constant 0 : i32
    return %c0_i32, %c0_i32_0 : i32, i32
  }
  func.func @transform_7(%arg0: i32) -> (i32, i32) {
    %c0_i32 = arith.constant 0 : i32
    %c0_i32_0 = arith.constant 0 : i32
    %c0_i32_1 = arith.constant 0 : i32
    return %c0_i32, %c0_i32_0 : i32, i32
  }
  func.func @transform_8(%arg0: i32) -> (i32, i32) {
    %c0_i32 = arith.constant 0 : i32
    %c0_i32_0 = arith.constant 0 : i32
    %c0_i32_1 = arith.constant 0 : i32
    return %c0_i32, %c0_i32_0 : i32, i32
  }
  func.func @transform_9(%arg0: i32) -> (i32, i32, i32) {
    %c0_i32 = arith.constant 0 : i32
    %c0_i32_0 = arith.constant 0 : i32
    %c0_i32_1 = arith.constant 0 : i32
    return %arg0, %c0_i32, %c0_i32_0 : i32, i32, i32
  }
}

</mosaic_0001>

<bundles_post_ra>
// kernel: tpu_custom_call.1
= control target key start
LH: loop header
LB: loop body
LE: loop exit
PB: predicated region body
PF: predicated region fallthrough
CT: control target
= control target key end

     0   :  { %s971_s30 = smov 0   ;;  %s1085_s0 = inlined_call_operand.vmem [shape: f32[2,4,16], index: 0, kind: input, shape index: {}]   ;;  %s1086_s1 = inlined_call_operand.vmem [shape: f32[24,4], index: 1, kind: input, shape index: {}]   ;;  %s1087_s2 = inlined_call_operand.vmem [shape: f32[24,1], index: 2, kind: input, shape index: {}]   ;;  %s1088_s3 = inlined_call_operand.vmem [shape: f32[8,24], index: 3, kind: input, shape index: {}]   ;;  %s1089_s4 = inlined_call_operand.vmem [shape: f32[8,1], index: 4, kind: input, shape index: {}]   ;;  %s1090_s5 = inlined_call_operand.vmem [shape: f32[8,40], index: 5, kind: input, shape index: {}]   ;;  %s1091_s6 = inlined_call_operand.vmem [shape: f32[8,1], index: 6, kind: input, shape index: {}]   ;;  %s1092_s7 = inlined_call_operand.vmem [shape: f32[8,4], index: 7, kind: input, shape index: {}]   ;;  %s1093_s8 = inlined_call_operand.vmem [shape: f32[8,1], index: 8, kind: input, shape index: {}]   ;;  %s1094_s9 = inlined_call_operand.vmem [shape: f32[2,32,16], index: 9, kind: output, shape index: {}]  }
   0x1 LB: > { %s810_s10 = sadd.s32 4294967295, %s912_s30   ;;  %p814_p0 = scmp.ge.s32.totalorder %s912_s30, 1  ;;  %s912_s30 = sphi %s971_s30, %s19_s30  }
   0x2   : > { %p286_p1 = scmp.lt.s32.totalorder %s912_s30, 3 }
   0x4   : > { %p287_p2 = pnand %p814_p0, %p286_p1 }
   0x5   : > { %p321_p3 = scmp.lt.s32.totalorder (!%p287_p2), %s810_s10, 1  ;;  %s917_s25 = smov (!%p287_p2), 1  }
   0x6   : > { %290 = sbr.rel (%p287_p2) target bundleno = 551 (0x227), region = 56  ;;  %s918_s26 = smov (!%p287_p2), 127  }
   0x7   : > { %s919_s27 = smov (!%p287_p2), 126   ;;  %s920_s11 = smov (!%p287_p2), 2  }
   0xb   : > { %vm330_vm0 = vcmask 1043584   ;;  %v914_v0 = vmov 0.0   ;;  %v354_v1 = vld [vmem:[%s1087_s2 + $0x8] sm:$0xff]  ;;  %s1098_s10 = smov (!%p321_p3, %s810_s10), 1  ;;  %vm915_vm1 = vmmov 0   ;;  %v916_v2 = vmov 0  }
   0xc   : > { %851 = vmatprep.subr.mxu0 %v914_v0  ;;  %331 = vst.msk [vmem:[#allocation2] sm:$0xf] %vm330_vm0, %v914_v0  ;;  %862 = vmatprep.subr.mxu1 %v914_v0  ;;  %s815_s13 = sshll.u32 %s1098_s10, 2  ;;  %vm333_vm2 = vcmask 125952   ;;  %v355_v3 = vld [vmem:[%s1087_s2 + $0x10] sm:$0xff]  ;;  %vm381_vm3 = vcmask 1043456   ;;  %v336_v25 = vlaneseq }
   0xd   : > { %853 = vmatprep.mubr.msk.f32.mxu0 %vm915_vm1, %v914_v0  ;;  %904 = vset.pattern.permute.xlu0 %v916_v2  ;;  %s324_s18 = scalar_lea.vmem %s1085_s0, %s815_s13  ;;  %v350_v5 = vld [vmem:[%s1086_s1] sm:$0xff]  ;;  %vm371_vm4 = vcmask 31744   ;;  %v351_v7 = vld [vmem:[%s1086_s1 + $0x8] sm:$0xff]  ;;  %v352_v8 = vld [vmem:[%s1086_s1 + $0x10] sm:$0xff]  ;;  %vm485_vm10 = vcmask 195584   ;;  %vm583_vm14 = vcmask 326656  }
   0xe   : > { %363 = vperm.xlu0 %904, %v354_v1   ;;  %868 = vmatprep.mubr.msk.f32.mxu1 %vm915_vm1, %v914_v0  ;;  %v332_v4 = vld [vmem:[%s324_s18] sm:$0xf]  ;;  %v337_v27 = vand.u32 127, %v336_v25  ;;  %s834_s24 = sshll.u32 %s1098_s10, 5  ;;  %vm750_vm15 = vcmask 130048  }
   0xf   : > { %905 = vset.pattern.permute.xlu1 %v916_v2  ;;  %334 = vst.msk [vmem:[#allocation2] sm:$0xf] %vm333_vm2, %v332_v4  ;;  %v353_v21 = vld [vmem:[%s1087_s2] sm:$0xff] }
  0x10   : > { %v577_v22 = vld [vmem:[%s1091_s6] sm:$0xff]  ;;  %vm345_vm5 = vcmp.lt.s32.totalorder %v337_v27, 15  ;;  %vm341_vm6 = vcmp.ge.s32.totalorder %v337_v27, 1  ;;  %vm342_vm7 = vcmp.lt.s32.totalorder %v337_v27, 17  ;;  %vm348_vm9 = vcmp.lt.s32.totalorder %v337_v27, 14 }
  0x11   : > { %v479_v23 = vld [vmem:[%s1089_s4] sm:$0xff]  ;;  %vm1038_vm8 = vmand %vm341_vm6, %vm342_vm7  ;;  %vm338_vm11 = vcmp.ge.s32.totalorder %v337_v27, 2  ;;  %vm339_vm12 = vcmp.lt.s32.totalorder %v337_v27, 18 }
  0x12   : > { %368 = vperm.xlu0 %904, %v355_v3   ;;  %v667_v24 = vld [vmem:[%s1093_s8] sm:$0xff]  ;;  %vm340_vm13 = vmand %vm338_vm11, %vm339_vm12 }
  0x13   : > { %v478_v31 = vld [vmem:[%s1088_s3] sm:$0xff] }
  0x14   : > { %v666_v40 = vld [vmem:[%s1092_s7] sm:$0xff] }
  0x15   : > { %v576_v41 = vld [vmem:[%s1090_s5] sm:$0xff] }
  0x16   : > { %v1001_v6 = vld [vmem:[#allocation2] sm:$0xf] }
  0x17   : > { %852 = vmatpush3.msk.msra.mxu0 %vm381_vm3, %v1001_v6  ;;  %658 = vrot.lane.b32.xlu1 %v1001_v6, %s917_s25 }
  0x18   : > { %854 = vmatmul.mubr.msk.f32.vlgmr.msra.gmra.mxu0 %vm371_vm4, %v350_v5  ;;  %871 = vmatprep.subr.mxu0 %v914_v0 }
  0x19   : > { %856 = vmatprep.mubr.msk.f32.mxu0 %vm915_vm1, %v914_v0 }
  0x1c   : > { %857 = vmatmul.mubr.msk.f32.gmra.mxu0 %vm371_vm4, %v351_v7 }
  0x1d   : > { %859 = vmatprep.mubr.msk.f32.mxu0 %vm915_vm1, %v914_v0 }
  0x20   : > { %860 = vmatmul.mubr.msk.f32.gmra.mxu0 %vm371_vm4, %v352_v8 }
  0x21   : > { %881 = vmatprep.mubr.msk.f32.mxu0 %vm915_vm1, %v914_v0 }
  0x89   : > { %v364_v10 = vpop.permute.xlu0 %363  ;;  %v659_v26 = vpop.permute.xlu1 %658 }
  0x8a   : > { %v662_v34 = vsel %vm1038_vm8, %v659_v26, %v1001_v6 }
  0x8b   : > { %v663_v35 = vmax.f32 %v1001_v6, %v662_v34 }
  0x8d   : > { %v369_v16 = vpop.permute.xlu0 %368 }
  0xd8   : > { %v1022_v9 = vpop.f32.mrf.mxu0 }
  0xda   : > { %v855_v11 = vpop.f32.mrf.mxu0 }
  0xdc   : > { %v456_v12 = vpop.f32.mrf.mxu0 }
  0xdd   : > { %v457_v13 = vadd.f32 %v456_v12, %v364_v10 }
  0xde   : > { %v858_v14 = vpop.f32.mrf.mxu0 }
  0xdf   : > { %v466_v15 = vmax.f32 %v457_v13, 0.0 }
  0xe0   : > { %v461_v17 = vpop.f32.mrf.mxu0 }
  0xe1   : > { %v462_v18 = vadd.f32 %v461_v17, %v369_v16  ;;  %468 = vrot.lane.b32.xlu0 %v466_v15, %s917_s25  ;;  %473 = vrot.lane.b32.xlu1 %v466_v15, %s918_s26 }
  0xe2   : > { %v861_v19 = vpop.f32.mrf.mxu0 }
  0xe3   : > { %v467_v20 = vmax.f32 %v462_v18, 0.0 }
  0xe5   : > { %568 = vrot.lane.b32.xlu0 %v467_v20, %s918_s26  ;;  %571 = vrot.lane.b32.xlu1 %v467_v20, %s919_s27  ;;  %s329_s27 = scalar_lea.vmem %s1094_s9, %s834_s24 }
  0xe9   : > { %565 = vrot.lane.b32.xlu0 %v467_v20, %s917_s25  ;;  %660 = vrot.lane.b32.xlu1 %v1001_v6, %s918_s26 }
  0xed   : > { %358 = vperm.xlu0 %904, %v353_v21   ;;  %560 = vrot.lane.b32.xlu1 %v467_v20, %s920_s11 }
  0xf1   : > { %580 = vperm.xlu0 %904, %v577_v22   ;;  %482 = vperm.xlu1 %905, %v479_v23  }
  0xf5   : > { %670 = vperm.xlu1 %905, %v667_v24  }
 0x153   : > { %v469_v28 = vpop.permute.xlu0 %468  ;;  %v474_v29 = vpop.permute.xlu1 %473 }
 0x154   : > { %863 = vmatpush3.msk.msra.mxu1 %vm345_vm5, %v474_v29 }
 0x155   : > { %864 = vmatprep.subr.mxu1 %v914_v0 }
 0x156   : > { %865 = vmatpush3.msra.mxu1 %v466_v15 }
 0x157   : > { %866 = vmatprep.subr.mxu1 %v914_v0  ;;  %v569_v32 = vpop.permute.xlu0 %568  ;;  %v572_v33 = vpop.permute.xlu1 %571 }
 0x158   : > { %867 = vmatpush3.msk.msra.mxu1 %vm1038_vm8, %v469_v28  ;;  %872 = vmatpush3.msk.msra.mxu0 %vm348_vm9, %v572_v33 }
 0x159   : > { %873 = vmatprep.subr.mxu0 %v914_v0  ;;  %869 = vmatmul.mubr.msk.f32.vlgmr.msra.gmra.mxu1 %vm485_vm10, %v478_v31 }
 0x15a   : > { %874 = vmatpush3.msk.msra.mxu0 %vm345_vm5, %v569_v32  ;;  %884 = vmatprep.subr.mxu1 %v914_v0 }
 0x15b   : > { %875 = vmatprep.subr.mxu0 %v914_v0  ;;  %v661_v36 = vpop.permute.xlu1 %660  ;;  %886 = vmatprep.mubr.msk.f32.mxu1 %vm915_vm1, %v914_v0  ;;  %v566_v38 = vpop.permute.xlu0 %565 }
 0x15c   : > { %v664_v37 = vsel %vm345_vm5, %v661_v36, %v1001_v6  ;;  %876 = vmatpush3.msra.mxu0 %v467_v20 }
 0x15d   : > { %v665_v39 = vmax.f32 %v663_v35, %v664_v37  ;;  %877 = vmatprep.subr.mxu0 %v914_v0 }
 0x15e   : > { %878 = vmatpush3.msk.msra.mxu0 %vm1038_vm8, %v566_v38 }
 0x15f   : > { %879 = vmatprep.subr.mxu0 %v914_v0  ;;  %885 = vmatpush3.msk.msra.mxu1 %vm381_vm3, %v665_v39  ;;  %v561_v42 = vpop.permute.xlu1 %560 }
 0x160   : > { %880 = vmatpush3.msk.msra.mxu0 %vm340_vm13, %v561_v42  ;;  %887 = vmatmul.mubr.msk.f32.vlgmr.msra.gmra.mxu1 %vm371_vm4, %v666_v40 }
 0x161   : > { %882 = vmatmul.mubr.msk.f32.vlgmr.msra.gmra.mxu0 %vm583_vm14, %v576_v41 }
 0x168   : > { %v359_v43 = vpop.permute.xlu0 %358 }
 0x169   : > { %v452_v44 = vadd.f32 %v1022_v9, %v359_v43 }
 0x16b   : > { %v465_v45 = vmax.f32 %v452_v44, 0.0 }
 0x16c   : > { %v483_v47 = vpop.permute.xlu1 %482  ;;  %v581_v53 = vpop.permute.xlu0 %580 }
 0x16d   : > { %751 = vst.msk [vmem:[%s329_s27] sm:$0xff] %vm750_vm15, %v465_v45 }
 0x170   : > { %v671_v52 = vpop.permute.xlu1 %670 }
 0x219   : > { %v555_v46 = vpop.f32.mrf.mxu1 }
 0x21a   : > { %v556_v48 = vadd.f32 %v555_v46, %v483_v47 }
 0x21b   : > { %v870_v49 = vpop.f32.mrf.mxu1 }
 0x21c   : > { %v559_v50 = vmax.f32 %v556_v48, 0.0 }
 0x21e   : > { %752 = vst.msk [vmem:[%s329_s27 + $0x8] sm:$0xff] %vm750_vm15, %v559_v50 }
 0x220   : > { %v745_v51 = vpop.f32.mrf.mxu1 }
 0x221   : > { %v746_v54 = vadd.f32 %v745_v51, %v671_v52  ;;  %v653_v55 = vpop.f32.mrf.mxu0 }
 0x222   : > { %v654_v56 = vadd.f32 %v653_v55, %v581_v53  ;;  %v888_v57 = vpop.f32.mrf.mxu1 }
 0x223   : > { %v749_v58 = vmax.f32 %v746_v54, 0.0  ;;  %v883_v59 = vpop.f32.mrf.mxu0 }
 0x224   : > { %v657_v60 = vmax.f32 %v654_v56, 0.0 }
 0x225   : > { %754 = vst.msk [vmem:[%s329_s27 + $0x18] sm:$0xff] %vm750_vm15, %v749_v58 }
 0x226   : > { %753 = vst.msk [vmem:[%s329_s27 + $0x10] sm:$0xff] %vm750_vm15, %v657_v60 }
 0x227 PF: > { %s19_s30 = sadd.s32 1, %s912_s30  }
 0x228   : > { %p16_p4 = scmp.ge.s32.totalorder %s19_s30, 4  }
 0x22a   :  { %18 = sbr.rel (!%p16_p4) target bundleno = 1 (0x1), region = 86 }

</bundles_post_ra>
